<compile_context>
chip_gen: v7x
topology: tpu7x:2x2x1
jax: 0.10.0
libtpu: 0.0.40
codegen_flags: <defaults>
</compile_context>

<pallas_src>
import functools
import math

import numpy as np
import jax
import jax.numpy as jnp
from jax.experimental import pallas as pl
from jax.experimental.pallas import tpu as pltpu


def _round_up(x, m):
    return ((x + m - 1) // m) * m


def _hann_window(win_length, periodic=True):
    # Matches torch.hann_window(win_length, periodic=True) for win_length > 1.
    if win_length == 1:
        return np.ones(1, dtype=np.float64)
    n = np.arange(win_length, dtype=np.float64)
    denom = float(win_length) if periodic else float(win_length - 1)
    return 0.5 - 0.5 * np.cos(2.0 * np.pi * n / denom)


def _istft_kernel(re_ref, im_ref, cos_ref, sin_ref, inv_env_ref, out_ref, contrib_ref,
                  *, hop, frames_per_chunk, r):
    """One (batch, frame-chunk) grid step of the inverse STFT.

    re_ref/im_ref  : (1, TF, K)      real / imag spectrogram frames for this chunk
    cos_ref/sin_ref: (K, n_fft)      windowed inverse-DFT bases (window + scale folded in)
    inv_env_ref    : (1, S, hop)     reciprocal of the overlap-added window^2 envelope
    out_ref        : (1, S, hop)     per-batch output accumulator (segments of `hop` samples)
    contrib_ref    : (TF+r-1, hop)   scratch for this chunk's overlap-add contribution
    """
    c = pl.program_id(1)

    @pl.when(c == 0)
    def _init():
        out_ref[...] = jnp.zeros_like(out_ref)

    # Windowed inverse DFT of this chunk's frames on the MXU: (TF, K) @ (K, n_fft).
    frames = jnp.dot(re_ref[0], cos_ref[...], preferred_element_type=jnp.float32)
    frames = frames + jnp.dot(im_ref[0], sin_ref[...], preferred_element_type=jnp.float32)

    # Overlap-add inside the chunk: n_fft = r * hop, so frame t touches output
    # segments t .. t+r-1.  Build the chunk contribution with r static shifted adds.
    contrib_ref[...] = jnp.zeros_like(contrib_ref)
    for j in range(r):                                          # r is small and static
        contrib_ref[j:j + frames_per_chunk, :] += frames[:, j * hop:(j + 1) * hop]

    # One aligned read-modify-write into the VMEM-resident output accumulator.
    seg0 = pl.multiple_of(c * frames_per_chunk, frames_per_chunk)
    span = frames_per_chunk + r - 1
    cur = out_ref[0, pl.ds(seg0, span), :]
    out_ref[0, pl.ds(seg0, span), :] = cur + contrib_ref[...]

    # Last chunk: normalize by the overlap-added window^2 envelope.
    @pl.when(c == pl.num_programs(1) - 1)
    def _finalize():
        out_ref[...] = out_ref[...] * inv_env_ref[...]


class InverseSpectrogram:
    """JAX/Pallas port of torchaudio.transforms.InverseSpectrogram (least-squares iSTFT)."""

    def __init__(self, n_fft=400, win_length=None, hop_length=None, pad=0,
                 window_fn=None, normalized=False, wkwargs=None,
                 center=True, pad_mode="reflect", onesided=True):
        self.n_fft = int(n_fft)
        self.win_length = int(win_length) if win_length is not None else self.n_fft
        self.hop_length = int(hop_length) if hop_length is not None else self.win_length // 2
        self.pad = int(pad)
        self.normalized = normalized
        self.center = center
        self.pad_mode = pad_mode          # only used by the forward Spectrogram transform
        self.onesided = onesided

        if self.win_length > self.n_fft:
            raise ValueError("win_length must be <= n_fft")
        if self.n_fft % self.hop_length != 0:
            # TODO(synk): general hop lengths need per-frame dynamic lane-offset overlap-add;
            # only hop_length | n_fft (the default hop = n_fft // 2) is kerneled here.
            raise NotImplementedError("Pallas iSTFT path requires hop_length to divide n_fft")

        if window_fn is None:
            window = _hann_window(self.win_length) if wkwargs is None \
                else _hann_window(self.win_length, **wkwargs)
        else:
            window = window_fn(self.win_length) if wkwargs is None \
                else window_fn(self.win_length, **wkwargs)
        self.window = np.asarray(window, dtype=np.float64).reshape(self.win_length)

        # Window zero-padded (centered) to n_fft, exactly like torch.istft.
        left = (self.n_fft - self.win_length) // 2
        wp = np.zeros(self.n_fft, dtype=np.float64)
        wp[left:left + self.win_length] = self.window
        self._window_padded = wp

        # torchaudio.functional.inverse_spectrogram: `normalized` rescales the spectrogram.
        if normalized is True or normalized == "window":
            scale = math.sqrt(float(np.sum(self.window ** 2)))
        elif normalized == "frame_length":
            scale = math.sqrt(float(self.win_length))
        else:
            scale = 1.0

        # Windowed inverse-(r)DFT bases:  frame[n] = sum_k re[k]*C[k,n] + im[k]*S[k,n]
        # (window, 1/n_fft and the `normalized` scale are all folded into the bases).
        N = self.n_fft
        self.freq = N // 2 + 1 if onesided else N
        k = np.arange(self.freq, dtype=np.float64)[:, None]
        n = np.arange(N, dtype=np.float64)[None, :]
        ang = 2.0 * np.pi * k * n / N
        if onesided:
            coef = np.full((self.freq, 1), 2.0)
            coef[0, 0] = 1.0
            if N % 2 == 0:
                coef[-1, 0] = 1.0
        else:
            coef = np.ones((self.freq, 1))
        cos_b = coef * np.cos(ang) / N * wp[None, :] * scale
        sin_b = -coef * np.sin(ang) / N * wp[None, :] * scale
        self._cos_basis = jnp.asarray(cos_b, dtype=jnp.float32)
        self._sin_basis = jnp.asarray(sin_b, dtype=jnp.float32)
        self._r = self.n_fft // self.hop_length

    def _inverse_envelope(self, n_frames, n_segments):
        """Reciprocal of OLA(window^2) over `n_frames` frames, shaped (1, n_segments, hop)."""
        hop, n_fft = self.hop_length, self.n_fft
        total = n_segments * hop
        wsq = self._window_padded ** 2
        env = np.zeros(total, dtype=np.float64)
        idx = (np.arange(n_frames)[:, None] * hop + np.arange(n_fft)[None, :]).ravel()
        np.add.at(env, idx, np.tile(wsq, n_frames))
        good = env > 1e-11
        inv = np.where(good, 1.0 / np.where(good, env, 1.0), 0.0)
        return jnp.asarray(inv.astype(np.float32).reshape(1, n_segments, hop))

    def __call__(self, spectrogram, length=None):
        spec = jnp.asarray(spectrogram)
        if not jnp.iscomplexobj(spec):
            raise ValueError("InverseSpectrogram expects a complex spectrogram")
        shape = spec.shape
        freq, n_frames = shape[-2], shape[-1]
        if freq != self.freq:
            raise ValueError(f"expected {self.freq} frequency bins, got {freq}")

        spec3 = spec.reshape(-1, freq, n_frames)
        batch = spec3.shape[0]
        sp = jnp.swapaxes(spec3, -1, -2)                      # (B, T, K): frames x freq
        re = jnp.real(sp).astype(jnp.float32)
        im = jnp.imag(sp).astype(jnp.float32)

        hop, n_fft, r = self.hop_length, self.n_fft, self._r

        # Chunk frames so VMEM holds only bounded slabs; pad T up to a chunk multiple.
        tf = min(128, _round_up(n_frames, 8))
        t_pad = _round_up(n_frames, tf)
        if t_pad > n_frames:
            pad_amt = t_pad - n_frames
            re = jnp.pad(re, ((0, 0), (0, pad_amt), (0, 0)))
            im = jnp.pad(im, ((0, 0), (0, pad_amt), (0, 0)))
        num_chunks = t_pad // tf

        n_seg = r + t_pad - 1                                 # output segments of `hop` samples
        out_len_pad = n_seg * hop                             # n_fft + hop*(t_pad - 1)
        out_len = n_fft + hop * (n_frames - 1)                # "real" iSTFT length

        inv_env = self._inverse_envelope(n_frames, n_seg)

        kernel = functools.partial(_istft_kernel, hop=hop, frames_per_chunk=tf, r=r)
        out = pl.pallas_call(
            kernel,
            out_shape=jax.ShapeDtypeStruct((batch, n_seg, hop), jnp.float32),
            grid_spec=pltpu.PrefetchScalarGridSpec(
                num_scalar_prefetch=0,
                grid=(batch, num_chunks),
                in_specs=[
                    pl.BlockSpec((1, tf, self.freq), lambda b, c: (b, c, 0)),
                    pl.BlockSpec((1, tf, self.freq), lambda b, c: (b, c, 0)),
                    pl.BlockSpec((self.freq, n_fft), lambda b, c: (0, 0)),
                    pl.BlockSpec((self.freq, n_fft), lambda b, c: (0, 0)),
                    pl.BlockSpec((1, n_seg, hop), lambda b, c: (0, 0, 0)),
                ],
                out_specs=pl.BlockSpec((1, n_seg, hop), lambda b, c: (b, 0, 0)),
                scratch_shapes=[pltpu.VMEM((tf + r - 1, hop), jnp.float32)],
            ),
            compiler_params=pltpu.CompilerParams(
                dimension_semantics=("parallel", "arbitrary"),
                vmem_limit_bytes=64 * 1024 * 1024,
            ),
        )(re, im, self._cos_basis, self._sin_basis, inv_env)

        y = out.reshape(batch, out_len_pad)

        # Trimming / `length` handling, mirroring torch.istft + F.inverse_spectrogram.
        length_adj = None if length is None else int(length) + 2 * self.pad
        start = n_fft // 2 if self.center else 0
        if length_adj is not None:
            end = start + length_adj
        elif self.center:
            end = out_len - n_fft // 2
        else:
            end = out_len
        end_avail = min(end, out_len_pad)
        y = y[:, start:end_avail]
        if length_adj is not None and y.shape[-1] < length_adj:
            y = jnp.pad(y, ((0, 0), (0, length_adj - y.shape[-1])))
        if length is not None and self.pad > 0:
            y = y[:, self.pad:-self.pad]
        return y.reshape(shape[:-2] + (y.shape[-1],))


def _reference_inverse_spectrogram(spec, length, pad, window, n_fft, hop_length,
                                   win_length, normalized, center, onesided):
    """Pure-JAX reference mirroring torchaudio.functional.inverse_spectrogram."""
    window = jnp.asarray(np.asarray(window, dtype=np.float32))
    if normalized is True or normalized == "window":
        spec = spec * jnp.sqrt(jnp.sum(window ** 2))
    elif normalized == "frame_length":
        spec = spec * (win_length ** 0.5)
    shape = spec.shape
    spec = spec.reshape(-1, shape[-2], shape[-1])
    b, _, t = spec.shape
    left = (n_fft - win_length) // 2
    wp = jnp.zeros((n_fft,), jnp.float32).at[left:left + win_length].set(window)
    sp = jnp.swapaxes(spec, -1, -2)
    if onesided:
        frames = jnp.fft.irfft(sp, n=n_fft, axis=-1)
    else:
        frames = jnp.real(jnp.fft.ifft(sp, axis=-1))
    frames = frames.astype(jnp.float32) * wp[None, None, :]
    full_len = n_fft + hop_length * (t - 1)
    idx = (jnp.arange(t)[:, None] * hop_length + jnp.arange(n_fft)[None, :]).reshape(-1)
    y = jnp.zeros((b, full_len), jnp.float32).at[:, idx].add(frames.reshape(b, -1))
    env = jnp.zeros((full_len,), jnp.float32).at[idx].add(jnp.tile(wp ** 2, (t,)))
    length_adj = None if length is None else int(length) + 2 * pad
    start = n_fft // 2 if center else 0
    if length_adj is not None:
        end = start + length_adj
    elif center:
        end = full_len - n_fft // 2
    else:
        end = full_len
    end_c = min(end, full_len)
    y = y[:, start:end_c]
    env_s = env[start:end_c]
    safe = env_s > 1e-11
    y = jnp.where(safe[None, :], y / jnp.where(safe, env_s, 1.0), 0.0)
    if length_adj is not None and y.shape[-1] < length_adj:
        y = jnp.pad(y, ((0, 0), (0, length_adj - y.shape[-1])))
    if length is not None and pad > 0:
        y = y[:, pad:-pad]
    return y.reshape(shape[:-2] + (y.shape[-1],))


if __name__ == "__main__":
    key = jax.random.PRNGKey(0)
    n_fft, win_length, hop = 32, 32, 16
    batch, freq, frames = 2, n_fft // 2 + 1, 12

    k_re, k_im = jax.random.split(key)
    re = jax.random.normal(k_re, (batch, freq, frames), dtype=jnp.float32)
    im = jax.random.normal(k_im, (batch, freq, frames), dtype=jnp.float32)
    # A real signal's rfft has purely-real DC and Nyquist bins.
    im = im.at[:, 0, :].set(0.0)
    im = im.at[:, -1, :].set(0.0)
    spec = (re + 1j * im).astype(jnp.complex64)

    transform = InverseSpectrogram(n_fft=n_fft)
    wav = jax.block_until_ready(transform(spec))

    wav_ref = _reference_inverse_spectrogram(
        spec, None, transform.pad, transform.window, transform.n_fft,
        transform.hop_length, transform.win_length, transform.normalized,
        transform.center, transform.onesided)

    assert wav.shape == (batch, hop * (frames - 1)), wav.shape
    assert wav.dtype == jnp.float32
    err = float(jnp.max(jnp.abs(wav - wav_ref)))
    assert err < 2e-3, f"mismatch vs reference: {err}"

    # Also exercise the explicit `length` path.
    length = hop * (frames - 1)
    wav2 = jax.block_until_ready(transform(spec, length))
    wav2_ref = _reference_inverse_spectrogram(
        spec, length, transform.pad, transform.window, transform.n_fft,
        transform.hop_length, transform.win_length, transform.normalized,
        transform.center, transform.onesided)
    assert wav2.shape == (batch, length)
    err2 = float(jnp.max(jnp.abs(wav2 - wav2_ref)))
    assert err2 < 2e-3, f"mismatch vs reference (length path): {err2}"

    print("KERNEL_OK")
</pallas_src>

<mosaic_0001>
module attributes {stable_mosaic.version = 11 : i64} {
  func.func @_istft_kernel(%arg0: i32, %arg1: i32, %arg2: memref<1x16x17xf32, #tpu.memory_space<vmem>>, %arg3: memref<1x16x17xf32, #tpu.memory_space<vmem>>, %arg4: memref<17x32xf32, #tpu.memory_space<vmem>>, %arg5: memref<17x32xf32, #tpu.memory_space<vmem>>, %arg6: memref<1x17x16xf32, #tpu.memory_space<vmem>>, %arg7: memref<1x17x16xf32, #tpu.memory_space<vmem>>, %arg8: memref<17x16xf32, #tpu.memory_space<vmem>>) attributes {dimension_semantics = [#tpu.dimension_semantics<parallel>, #tpu.dimension_semantics<arbitrary>], iteration_bounds = array<i64: 2, 1>, scalar_prefetch = 0 : i64, scratch_operands = 1 : i64, tpu.core_type = #tpu.core_type<tc>, window_params = [{transform_indices = @transform_0, window_bounds = array<i64: 1, 16, 17>}, {transform_indices = @transform_1, window_bounds = array<i64: 1, 16, 17>}, {pipeline_mode = #tpu.pipeline_mode<synchronous>, transform_indices = @transform_2, window_bounds = array<i64: 17, 32>}, {pipeline_mode = #tpu.pipeline_mode<synchronous>, transform_indices = @transform_3, window_bounds = array<i64: 17, 32>}, {pipeline_mode = #tpu.pipeline_mode<synchronous>, transform_indices = @transform_4, window_bounds = array<i64: 1, 17, 16>}, {transform_indices = @transform_5, window_bounds = array<i64: 1, 17, 16>}]} {
    %c0_i32 = arith.constant 0 : i32
    %0 = arith.cmpi eq, %arg1, %c0_i32 : i32
    %1 = arith.extui %0 : i1 to i32
    %c0_i32_0 = arith.constant 0 : i32
    %2 = arith.cmpi ne, %1, %c0_i32_0 : i32
    scf.if %2 {
      %cst_29 = arith.constant 0.000000e+00 : f32
      %36 = vector.broadcast %cst_29 : f32 to vector<1x17x16xf32>
      %c0_30 = arith.constant 0 : index
      %c0_31 = arith.constant 0 : index
      %c0_32 = arith.constant 0 : index
      %37 = vector.load %arg7[%c0_30, %c0_31, %c0_32] : memref<1x17x16xf32, #tpu.memory_space<vmem>>, vector<1x17x16xf32>
      tpu.vector_store %arg7[%c0_30, %c0_31, %c0_32], %36 {strides = array<i32>} : memref<1x17x16xf32, #tpu.memory_space<vmem>>, vector<1x17x16xf32>,
    } else {
    }
    %c0 = arith.constant 0 : index
    %c0_1 = arith.constant 0 : index
    %c0_2 = arith.constant 0 : index
    %3 = vector.load %arg2[%c0, %c0_1, %c0_2] : memref<1x16x17xf32, #tpu.memory_space<vmem>>, vector<1x16x17xf32>
    %4 = vector.shape_cast %3 : vector<1x16x17xf32> to vector<16x17xf32>
    %c0_3 = arith.constant 0 : index
    %c0_4 = arith.constant 0 : index
    %5 = vector.load %arg4[%c0_3, %c0_4] : memref<17x32xf32, #tpu.memory_space<vmem>>, vector<17x32xf32>
    %cst = arith.constant dense<0.000000e+00> : vector<16x32xf32>
    %6 = tpu.matmul %4, %5, %cst {dimension_numbers = #tpu.dot_dimension_numbers<[1], [0], [0], [1], [0, 0, 1, 1], [], []>} : vector<16x17xf32>, vector<17x32xf32>, vector<16x32xf32> -> vector<16x32xf32>
    %c0_5 = arith.constant 0 : index
    %c0_6 = arith.constant 0 : index
    %c0_7 = arith.constant 0 : index
    %7 = vector.load %arg3[%c0_5, %c0_6, %c0_7] : memref<1x16x17xf32, #tpu.memory_space<vmem>>, vector<1x16x17xf32>
    %8 = vector.shape_cast %7 : vector<1x16x17xf32> to vector<16x17xf32>
    %c0_8 = arith.constant 0 : index
    %c0_9 = arith.constant 0 : index
    %9 = vector.load %arg5[%c0_8, %c0_9] : memref<17x32xf32, #tpu.memory_space<vmem>>, vector<17x32xf32>
    %cst_10 = arith.constant dense<0.000000e+00> : vector<16x32xf32>
    %10 = tpu.matmul %8, %9, %cst_10 {dimension_numbers = #tpu.dot_dimension_numbers<[1], [0], [0], [1], [0, 0, 1, 1], [], []>} : vector<16x17xf32>, vector<17x32xf32>, vector<16x32xf32> -> vector<16x32xf32>
    %11 = arith.addf %6, %10 : vector<16x32xf32>
    %cst_11 = arith.constant 0.000000e+00 : f32
    %12 = vector.broadcast %cst_11 : f32 to vector<17x16xf32>
    %c0_12 = arith.constant 0 : index
    %c0_13 = arith.constant 0 : index
    %13 = vector.load %arg8[%c0_12, %c0_13] : memref<17x16xf32, #tpu.memory_space<vmem>>, vector<17x16xf32>
    tpu.vector_store %arg8[%c0_12, %c0_13], %12 {strides = array<i32>} : memref<17x16xf32, #tpu.memory_space<vmem>>, vector<17x16xf32>,
    %c0_14 = arith.constant 0 : index
    %c0_15 = arith.constant 0 : index
    %14 = vector.load %arg8[%c0_14, %c0_15] : memref<17x16xf32, #tpu.memory_space<vmem>>, vector<16x16xf32>
    %15 = vector.extract_strided_slice %11 {offsets = [0, 0], sizes = [16, 16], strides = [1, 1]} : vector<16x32xf32> to vector<16x16xf32>
    %16 = arith.addf %14, %15 : vector<16x16xf32>
    %c0_16 = arith.constant 0 : index
    %c0_17 = arith.constant 0 : index
    %17 = vector.load %arg8[%c0_16, %c0_17] : memref<17x16xf32, #tpu.memory_space<vmem>>, vector<16x16xf32>
    tpu.vector_store %arg8[%c0_16, %c0_17], %16 {strides = array<i32>} : memref<17x16xf32, #tpu.memory_space<vmem>>, vector<16x16xf32>,
    %c1 = arith.constant 1 : index
    %c0_18 = arith.constant 0 : index
    %18 = vector.load %arg8[%c1, %c0_18] : memref<17x16xf32, #tpu.memory_space<vmem>>, vector<16x16xf32>
    %19 = vector.extract_strided_slice %11 {offsets = [0, 16], sizes = [16, 16], strides = [1, 1]} : vector<16x32xf32> to vector<16x16xf32>
    %20 = arith.addf %18, %19 : vector<16x16xf32>
    %c1_19 = arith.constant 1 : index
    %c0_20 = arith.constant 0 : index
    %21 = vector.load %arg8[%c1_19, %c0_20] : memref<17x16xf32, #tpu.memory_space<vmem>>, vector<16x16xf32>
    tpu.vector_store %arg8[%c1_19, %c0_20], %20 {strides = array<i32>} : memref<17x16xf32, #tpu.memory_space<vmem>>, vector<16x16xf32>,
    %c16_i32 = arith.constant 16 : i32
    %22 = arith.muli %arg1, %c16_i32 : i32
    %23 = tpu.assume_multiple %22, 16 : i32
    %c0_21 = arith.constant 0 : index
    %24 = arith.index_cast %23 : i32 to index
    %c0_22 = arith.constant 0 : index
    %25 = vector.load %arg7[%c0_21, %24, %c0_22] : memref<1x17x16xf32, #tpu.memory_space<vmem>>, vector<1x17x16xf32>
    %26 = vector.shape_cast %25 : vector<1x17x16xf32> to vector<17x16xf32>
    %c0_23 = arith.constant 0 : index
    %c0_24 = arith.constant 0 : index
    %27 = vector.load %arg8[%c0_23, %c0_24] : memref<17x16xf32, #tpu.memory_space<vmem>>, vector<17x16xf32>
    %28 = arith.addf %26, %27 : vector<17x16xf32>
    %c0_25 = arith.constant 0 : index
    %29 = arith.index_cast %23 : i32 to index
    %c0_26 = arith.constant 0 : index
    %30 = vector.load %arg7[%c0_25, %29, %c0_26] : memref<1x17x16xf32, #tpu.memory_space<vmem>>, vector<1x17x16xf32>
    %31 = vector.shape_cast %30 : vector<1x17x16xf32> to vector<17x16xf32>
    %32 = vector.shape_cast %28 : vector<17x16xf32> to vector<1x17x16xf32>
    tpu.vector_store %arg7[%c0_25, %29, %c0_26], %32 {strides = array<i32>} : memref<1x17x16xf32, #tpu.memory_space<vmem>>, vector<1x17x16xf32>,
    %c0_i32_27 = arith.constant 0 : i32
    %33 = arith.cmpi eq, %arg1, %c0_i32_27 : i32
    %34 = arith.extui %33 : i1 to i32
    %c0_i32_28 = arith.constant 0 : i32
    %35 = arith.cmpi ne, %34, %c0_i32_28 : i32
    scf.if %35 {
      %c0_29 = arith.constant 0 : index
      %c0_30 = arith.constant 0 : index
      %c0_31 = arith.constant 0 : index
      %36 = vector.load %arg7[%c0_29, %c0_30, %c0_31] : memref<1x17x16xf32, #tpu.memory_space<vmem>>, vector<1x17x16xf32>
      %c0_32 = arith.constant 0 : index
      %c0_33 = arith.constant 0 : index
      %c0_34 = arith.constant 0 : index
      %37 = vector.load %arg6[%c0_32, %c0_33, %c0_34] : memref<1x17x16xf32, #tpu.memory_space<vmem>>, vector<1x17x16xf32>
      %38 = arith.mulf %36, %37 : vector<1x17x16xf32>
      %c0_35 = arith.constant 0 : index
      %c0_36 = arith.constant 0 : index
      %c0_37 = arith.constant 0 : index
      %39 = vector.load %arg7[%c0_35, %c0_36, %c0_37] : memref<1x17x16xf32, #tpu.memory_space<vmem>>, vector<1x17x16xf32>
      tpu.vector_store %arg7[%c0_35, %c0_36, %c0_37], %38 {strides = array<i32>} : memref<1x17x16xf32, #tpu.memory_space<vmem>>, vector<1x17x16xf32>,
    } else {
    }
    return
  }
  func.func @transform_0(%arg0: i32, %arg1: i32) -> (i32, i32, i32) {
    %c0_i32 = arith.constant 0 : i32
    %c0_i32_0 = arith.constant 0 : i32
    return %arg0, %arg1, %c0_i32 : i32, i32, i32
  }
  func.func @transform_1(%arg0: i32, %arg1: i32) -> (i32, i32, i32) {
    %c0_i32 = arith.constant 0 : i32
    %c0_i32_0 = arith.constant 0 : i32
    return %arg0, %arg1, %c0_i32 : i32, i32, i32
  }
  func.func @transform_2(%arg0: i32, %arg1: i32) -> (i32, i32) {
    %c0_i32 = arith.constant 0 : i32
    %c0_i32_0 = arith.constant 0 : i32
    %c0_i32_1 = arith.constant 0 : i32
    return %c0_i32, %c0_i32_0 : i32, i32
  }
  func.func @transform_3(%arg0: i32, %arg1: i32) -> (i32, i32) {
    %c0_i32 = arith.constant 0 : i32
    %c0_i32_0 = arith.constant 0 : i32
    %c0_i32_1 = arith.constant 0 : i32
    return %c0_i32, %c0_i32_0 : i32, i32
  }
  func.func @transform_4(%arg0: i32, %arg1: i32) -> (i32, i32, i32) {
    %c0_i32 = arith.constant 0 : i32
    %c0_i32_0 = arith.constant 0 : i32
    %c0_i32_1 = arith.constant 0 : i32
    %c0_i32_2 = arith.constant 0 : i32
    return %c0_i32, %c0_i32_0, %c0_i32_1 : i32, i32, i32
  }
  func.func @transform_5(%arg0: i32, %arg1: i32) -> (i32, i32, i32) {
    %c0_i32 = arith.constant 0 : i32
    %c0_i32_0 = arith.constant 0 : i32
    %c0_i32_1 = arith.constant 0 : i32
    return %arg0, %c0_i32, %c0_i32_0 : i32, i32, i32
  }
}

</mosaic_0001>

<bundles_post_ra>
// kernel: tpu_custom_call.1
= control target key start
LH: loop header
LB: loop body
LE: loop exit
PB: predicated region body
PF: predicated region fallthrough
CT: control target
= control target key end

     0   :  { %s1577_s0 = inlined_call_operand.hbm [shape: f32[2,16,17], index: 0, kind: input, shape index: {}]   ;;  %s1578_s1 = inlined_call_operand.hbm [shape: f32[2,16,17], index: 1, kind: input, shape index: {}]   ;;  %s1579_s2 = inlined_call_operand.hbm [shape: f32[17,32], index: 2, kind: input, shape index: {}]   ;;  %s1580_s3 = inlined_call_operand.hbm [shape: f32[17,32], index: 3, kind: input, shape index: {}]   ;;  %s1581_s4 = inlined_call_operand.hbm [shape: f32[1,17,16], index: 4, kind: input, shape index: {}]   ;;  %s1582_s5 = inlined_call_operand.hbm [shape: f32[2,17,16], index: 5, kind: output, shape index: {}]  }
   0x1   :  { %1591 = sst [smem:[#allocation19_spill]] %s1577_s0 }
   0x2   :  { %1592 = sst [smem:[#allocation20_spill]] %s1579_s2 }
   0x3   :  { %1593 = sst [smem:[#allocation21_spill]] %s1580_s3 }
   0x4   :  { %10 = vsyncpa [#allocation4], 0 }
   0x5   :  { %12 = vsyncpa [#allocation4 + $0x1], 0 }
   0x6   :  { %13 = vsyncpa [#allocation7], 0 }
   0x7   :  { %15 = vsyncpa [#allocation7 + $0x1], 0 }
   0x8   :  { %16 = vsyncpa [#allocation10], 0 }
   0x9   :  { %17 = vsyncpa [#allocation5], 0 }
   0xa   :  { %19 = vsyncpa [#allocation5 + $0x1], 0  ;;  %s1201_s18 = smov 0   ;;  %s1203_s19 = smov 0  }
   0xb   :  { %s1205_s20 = smov 0   ;;  %s1207_s21 = smov 0  }
   0xc   :  { %s1209_s22 = smov 0   ;;  %s1211_s23 = smov 0  }
   0xd LB: > { %s1232_s24 = sadd.s32 4294967295, %s1157_s23   ;;  %s746_s25 = sadd.s32 4294967294, %s1157_s23   ;;  %s1157_s23 = sphi %s1211_s23, %s25_s23   ;;  %s1153_s22 = sphi %s1209_s22, %s1621_s22   ;;  %s1149_s21 = sphi %s1207_s21, %s1620_s21   ;;  %s1145_s20 = sphi %s1205_s20, %s1619_s20   ;;  %s1141_s19 = sphi %s1203_s19, %s1618_s19   ;;  %s1137_s18 = sphi %s1201_s18, %s1617_s18  }
   0xe   : > { %p59_p0 = scmp.ne.s32.totalorder %s1141_s19, %s1137_s18  ;;  %p1583_p1 = scmp.eq.s32.totalorder %s1232_s24, 0 }
   0xf   : > { %p180_p3 = scmp.eq.s32.totalorder %s746_s25, 1  ;;  %p747_p5 = scmp.ge.s32.totalorder %s1157_s23, 1 }
  0x10   : > { %p1241_p4 = por %p1583_p1, %p59_p0  ;;  %p187_p7 = scmp.lt.s32.totalorder %s1157_s23, 3 }
  0x11   : > { %p1246_p6 = por %p180_p3, %p59_p0  ;;  %s1159_s29 = smov [#allocation8]  }
  0x12   : > { %s1594_s26 = scalar_select %p1241_p4, 1, 0 }
  0x13   : > { %s1595_s27 = scalar_select %p1246_p6, 1, 0 }
  0x14   : > { %p1251_p8 = pnand %p747_p5, %p187_p7  ;;  %s199_s30 = sshll.u32 %s1159_s29, 4  ;;  %s1255_s30 = int_to_ptr.vmem [resolvable:$true] %s199_s30 }
  0x15   : > { %1596 = sst [smem:[#allocation18_spill]] %s1595_s27  ;;  %s1160_s7 = smov [#allocation9]  }
  0x16   : > { %s1597_s28 = scalar_select %p1251_p8, 1, 0 }
  0x17   : > { %p833_p9 = pneg %p1251_p8  ;;  %s212_s8 = sshll.u32 %s1160_s7, 4  ;;  %s1266_s8 = int_to_ptr.vmem [resolvable:$true] %s212_s8 }
  0x18   : > { %s1161_s9 = smov [#allocation11]   ;;  %s1599_s2 = sld [smem:[#allocation20_spill]] }
  0x19   : > { %p1262_p11 = pnand %p833_p9, %p1583_p1  ;;  %s1268_s10 = sshll.u32 %s1161_s9, 4  ;;  %s226_s10 = int_to_ptr.vmem [resolvable:$true] %s1268_s10 }
  0x1b   : > { %p1278_p13 = pneg %p1262_p11 }
  0x1e   : > { %s919_s13 = scalar_lea.hbm %s1599_s2, 384 }
  0x1f   : > { %p920_p12 = scmp.ne.s32.totalorder %s1599_s2, %s919_s13  ;;  %p926_p5 = scmp.lt.u32.totalorder %s919_s13, %s1599_s2 }
  0x21   : > { %p922_p0 = pnand %p1278_p13, %p920_p12 }
  0x23   : > { %p923_p3 = pneg %p922_p0 }
  0x25   : > { %p928_p7 = pnand %p926_p5, %p923_p3 }
  0x27   : > { %931 = shalt.err (!%p928_p7)
}
  0x28   : > { %s932_s29 = scalar_lea.vmem %s1255_s30, 384  ;;  %p940_p2 = scmp.lt.s32.totalorder %s1255_s30, %s1255_s30 }
  0x29   : > { %p933_p9 = scmp.ne.s32.totalorder %s1255_s30, %s932_s29  ;;  %p941_p6 = scmp.lt.s32.totalorder %s932_s29, %s932_s29 }
  0x2b   : > { %p935_p10 = pnand %p933_p9, %p1278_p13  ;;  %p942_p12 = por %p941_p6, %p940_p2 }
  0x2d   : > { %p936_p1 = pneg %p935_p10 }
  0x2f   : > { %p943_p0 = pnand %p942_p12, %p936_p1 }
  0x31   : > { %946 = shalt.err (!%p943_p0)
}
  0x32   : > { %s1587_s7 = smov 128   ;;  %s1589_s9 = smov 8  }
  0x33   : > { %836 = dma.hbm_to_vmem [thread:$0]  (!%p1262_p11), %s1599_s2, 384, %s1255_s30, [#allocation7], %s1587_s7, %s1587_s7, %s1589_s9  }
  0x34   : > { %s1601_s3 = sld [smem:[#allocation21_spill]] }
  0x3a   : > { %s947_s15 = scalar_lea.hbm %s1601_s3, 384 }
  0x3b   : > { %p948_p1 = scmp.ne.s32.totalorder %s1601_s3, %s947_s15  ;;  %p954_p10 = scmp.lt.u32.totalorder %s947_s15, %s1601_s3 }
  0x3d   : > { %p950_p2 = pnand %p948_p1, %p1278_p13 }
  0x3f   : > { %p951_p6 = pneg %p950_p2 }
  0x41   : > { %p956_p3 = pnand %p954_p10, %p951_p6 }
  0x43   : > { %959 = shalt.err (!%p956_p3)
}
  0x44   : > { %s960_s30 = scalar_lea.vmem %s1266_s8, 384  ;;  %p968_p12 = scmp.lt.s32.totalorder %s1266_s8, %s1266_s8 }
  0x45   : > { %p961_p5 = scmp.ne.s32.totalorder %s1266_s8, %s960_s30  ;;  %p969_p0 = scmp.lt.s32.totalorder %s960_s30, %s960_s30 }
  0x47   : > { %p963_p7 = pnand %p961_p5, %p1278_p13  ;;  %p970_p1 = por %p969_p0, %p968_p12 }
  0x49   : > { %p964_p9 = pneg %p963_p7 }
  0x4b   : > { %p971_p2 = pnand %p970_p1, %p964_p9 }
  0x4d   : > { %974 = shalt.err (!%p971_p2)
}
  0x4e   : > { %839 = dma.hbm_to_vmem [thread:$0]  (!%p1262_p11), %s1601_s3, 384, %s1266_s8, [#allocation10], %s1587_s7, %s1587_s7, %s1589_s9  }
  0x4f   : > { %s975_s14 = scalar_lea.hbm %s1581_s4, 384 }
  0x50   : > { %p976_p6 = scmp.ne.s32.totalorder %s1581_s4, %s975_s14  ;;  %p982_p5 = scmp.lt.u32.totalorder %s975_s14, %s1581_s4 }
  0x52   : > { %p978_p10 = pnand %p976_p6, %p1278_p13 }
  0x54   : > { %p979_p3 = pneg %p978_p10 }
  0x56   : > { %p984_p7 = pnand %p982_p5, %p979_p3 }
  0x58   : > { %987 = shalt.err (!%p984_p7)
}
  0x59   : > { %s988_s30 = scalar_lea.vmem %s226_s10, 384  ;;  %p996_p1 = scmp.lt.s32.totalorder %s226_s10, %s226_s10 }
  0x5a   : > { %p989_p9 = scmp.ne.s32.totalorder %s226_s10, %s988_s30  ;;  %p997_p2 = scmp.lt.s32.totalorder %s988_s30, %s988_s30 }
  0x5c   : > { %p991_p12 = pnand %p989_p9, %p1278_p13  ;;  %p998_p4 = por %p997_p2, %p996_p1 }
  0x5e   : > { %p992_p0 = pneg %p991_p12 }
  0x60   : > { %p999_p8 = pnand %p998_p4, %p992_p0 }
  0x62   : > { %1002 = shalt.err (!%p999_p8)
}
  0x63   : > { %842 = dma.hbm_to_vmem [thread:$0]  (!%p1262_p11), %s1581_s4, 384, %s226_s10, [#allocation10], %s1587_s7, %s1587_s7, %s1589_s9  }
  0x64   : > { %s46_s16 = sadd.s32 1, %s1145_s20  ;;  %s37_s6 = sadd.s32 1, %s1153_s22 }
  0x65   : > { %p53_p4 = scmp.ne.s32.totalorder %s1145_s20, %s1141_s19  ;;  %p39_p8 = scmp.ge.s32.totalorder %s37_s6, 2 }
  0x66   : > { %p54_p13 = scmp.eq.s32.totalorder %s1157_s23, 0  ;;  %p1602_p6 = scmp.eq.s32.totalorder %s1232_s24, 1 }
  0x67   : > { %p857_p3 = scmp.lt.s32.totalorder %s1157_s23, 2  ;;  %s1623_s6 = smov (%p39_p8, %s37_s6), 0 }
  0x68   : > { %p1357_p10 = por %p1602_p6, %p53_p4  ;;  %p55_p5 = por %p54_p13, %p53_p4 }
  0x69   : > { %s239_s12 = sand.u32 1, %s1145_s20   ;;  %s41_s13 = ssub.s32 %s1153_s22, %s1623_s6 }
  0x6a   : > { %p44_p7 = scmp.eq.s32.totalorder %s41_s13, 0  ;;  %s752_s10 = sshll.u32 %s239_s12, 4 }
  0x6b   : > { %s773_s14 = sshll.u32 %s1153_s22, 8  ;;  %s1604_s0 = sld [smem:[#allocation19_spill]] }
  0x6c   : > { %s1369_s15 = scalar_select %p44_p7, %s1145_s20, %s46_s16  }
  0x6d   : > { %s243_s30 = scalar_lea.vmem [#allocation3], %s752_s10  ;;  %p1380_p11 = pnand %p857_p3, %p55_p5 }
  0x6e   : > { %s252_s8 = sshll.u32 %s243_s30, 4  ;;  %s1387_s17 = scalar_lea.hbm %s1578_s1, %s773_s14  ;;  %s1376_s8 = int_to_ptr.vmem [resolvable:$true] %s252_s8 }
  0x6f   : > { %s266_s25 = scalar_lea.vmem [#allocation6], %s752_s10  ;;  %s1391_s9 = scalar_lea.sflag [#allocation4], %s239_s12 }
  0x70   : > { %s1389_s7 = sshll.u32 %s266_s25, 4  ;;  %p1005_p12 = pneg %p1380_p11  ;;  %s1423_s7 = int_to_ptr.vmem [resolvable:$true] %s1389_s7 }
  0x71   : > { %s1374_s29 = scalar_lea.hbm %s1604_s0, %s773_s14  ;;  %s1008_s16 = scalar_lea.hbm %s1604_s0, 512 }
  0x72   : > { %s1003_s30 = scalar_lea.hbm %s1374_s29, 256  ;;  %p1009_p2 = scmp.lt.u32.totalorder %s1374_s29, %s1604_s0 }
  0x73   : > { %p1004_p9 = scmp.ne.s32.totalorder %s1374_s29, %s1003_s30  ;;  %p1010_p4 = scmp.lt.u32.totalorder %s1008_s16, %s1003_s30 }
  0x74   : > { %p1012_p13 = scmp.lt.u32.totalorder %s1003_s30, %s1374_s29 }
  0x75   : > { %p1006_p0 = pnand %p1005_p12, %p1004_p9  ;;  %p1011_p8 = por %p1010_p4, %p1009_p2 }
  0x77   : > { %p1007_p1 = pneg %p1006_p0  ;;  %p1013_p6 = por %p1012_p13, %p1011_p8 }
  0x79   : > { %p1014_p3 = pnand %p1013_p6, %p1007_p1 }
  0x7b   : > { %1017 = shalt.err (!%p1014_p3)
}
  0x7c   : > { %s1018_s12 = scalar_lea.vmem %s1376_s8, 256  ;;  %s1164_s2 = smov [#allocation3]  }
  0x7d   : > { %p1019_p5 = scmp.ne.s32.totalorder %s1376_s8, %s1018_s12  ;;  %s1023_s3 = sshll.u32 %s1164_s2, 4  ;;  %s1024_s3 = int_to_ptr.vmem [resolvable:$false] %s1023_s3 }
  0x7e   : > { %s1025_s10 = scalar_lea.vmem %s1024_s3, 512  ;;  %p1026_p0 = scmp.lt.s32.totalorder %s1376_s8, %s1024_s3 }
  0x7f   : > { %p1021_p7 = pnand %p1019_p5, %p1005_p12  ;;  %p1027_p2 = scmp.lt.s32.totalorder %s1025_s10, %s1018_s12 }
  0x81   : > { %p1022_p9 = pneg %p1021_p7  ;;  %p1028_p4 = por %p1027_p2, %p1026_p0 }
  0x83   : > { %p1029_p8 = pnand %p1028_p4, %p1022_p9 }
  0x85   : > { %1032 = shalt.err (!%p1029_p8)
}
  0x86   : > { %s1606_s25 = smov 8   ;;  %s1607_s30 = smov 128  }
  0x87   : > { %846 = dma.hbm_to_vmem [thread:$0]  (!%p1380_p11), %s1374_s29, 256, %s1376_s8, %s1391_s9, %s1607_s30, %s1607_s30, %s1606_s25  }
  0x88   : > { %s262_s16 = sand.u32 1, %s1157_s23   ;;  %s1033_s14 = scalar_lea.hbm %s1387_s17, 256 }
  0x89   : > { %s1426_s13 = scalar_lea.sflag [#allocation7], %s262_s16  ;;  %p1034_p1 = scmp.ne.s32.totalorder %s1387_s17, %s1033_s14 }
  0x8a   : > { %s1038_s3 = scalar_lea.hbm %s1578_s1, 512  ;;  %p1039_p3 = scmp.lt.u32.totalorder %s1387_s17, %s1578_s1 }
  0x8b   : > { %p1036_p13 = pnand %p1034_p1, %p1005_p12  ;;  %p1040_p5 = scmp.lt.u32.totalorder %s1038_s3, %s1033_s14 }
  0x8c   : > { %p1042_p9 = scmp.lt.u32.totalorder %s1033_s14, %s1387_s17 }
  0x8d   : > { %p1037_p6 = pneg %p1036_p13  ;;  %p1041_p7 = por %p1040_p5, %p1039_p3 }
  0x8f   : > { %p1043_p0 = por %p1042_p9, %p1041_p7 }
  0x91   : > { %p1044_p2 = pnand %p1043_p0, %p1037_p6 }
  0x93   : > { %1047 = shalt.err (!%p1044_p2)
}
  0x94   : > { %s1048_s9 = scalar_lea.vmem %s1423_s7, 256  ;;  %s1165_s29 = smov [#allocation6]  }
  0x95   : > { %p1049_p4 = scmp.ne.s32.totalorder %s1423_s7, %s1048_s9  ;;  %s1053_s8 = sshll.u32 %s1165_s29, 4  ;;  %s1054_s8 = int_to_ptr.vmem [resolvable:$false] %s1053_s8 }
  0x96   : > { %s1055_s0 = scalar_lea.vmem %s1054_s8, 512  ;;  %p1056_p13 = scmp.lt.s32.totalorder %s1423_s7, %s1054_s8 }
  0x97   : > { %p1051_p8 = pnand %p1049_p4, %p1005_p12  ;;  %p1057_p3 = scmp.lt.s32.totalorder %s1055_s0, %s1048_s9 }
  0x99   : > { %p1052_p1 = pneg %p1051_p8  ;;  %p1058_p5 = por %p1057_p3, %p1056_p13 }
  0x9b   : > { %p1059_p7 = pnand %p1058_p5, %p1052_p1 }
  0x9d   : > { %1062 = shalt.err (!%p1059_p7)
}
  0x9e   : > { %849 = dma.hbm_to_vmem [thread:$0]  (!%p1380_p11), %s1387_s17, 256, %s1423_s7, %s1426_s13, %s1607_s30, %s1607_s30, %s1606_s25  }
  0x9f   : > { %p1608_p12 = scmp.ne.s32.totalorder %s1597_s28, 0 }
  0xa0   : > { %s1458_s16 = sand.u32 (!%p1608_p12), 1, %s1141_s19   ;;  %p1609_p6 = scmp.ne.s32.totalorder (!%p1608_p12), %s1594_s26, 0 }
  0xa1   : > { %287 = sbr.rel (%p1608_p12) target bundleno = 561 (0x231), region = 40  ;;  %s759_s14 = sshll.u32 (!%p1608_p12), %s1458_s16, 4 }
  0xa2   : > { %s290_s12 = scalar_lea.sflag (!%p1608_p12), [#allocation4], %s1458_s16  ;;  %s1462_s2 = scalar_lea.vmem (!%p1608_p12), [#allocation3], %s759_s14 }
  0xa8   : > { %1116 = dma.done.wait (%p1609_p6), %s290_s12, 256  }
  0xa9   : > { %1118 = vsyncadd (%p1609_p6), %s290_s12, 4294967040  ;;  %s298_s7 = sand.u32 1, %s1232_s24   ;;  %s302_s27 = scalar_lea.vmem [#allocation6], %s759_s14 }
  0xaa   : > { %s299_s28 = scalar_lea.sflag [#allocation7], %s298_s7 }
  0xab   : > { %1120 = dma.done.wait (%p1609_p6), %s299_s28, 256  }
  0xac   : > { %1122 = vsyncadd (%p1609_p6), %s299_s28, 4294967040  ;;  %p1610_p11 = scmp.eq.s32.totalorder %s1232_s24, 0 }
  0xae   : > { %1124 = dma.done.wait (%p1610_p11), [#allocation7], 384   ;;  %p1611_p9 = pmov %p1610_p11 }
  0xb0   : > { %1126 = vsyncadd (%p1611_p9), [#allocation7], 4294966912  ;;  %p1612_p0 = pmov %p1611_p9 }
  0xb2   : > { %1128 = dma.done.wait (%p1612_p0), [#allocation10], 768   ;;  %p1613_p2 = pmov %p1612_p0 }
  0xb3   : > { %v364_v0 = vld [vmem:[#allocation9] sm:$0xff]  ;;  %v365_v1 = vld [vmem:[#allocation9 + $0x8] sm:$0xff]  ;;  %vm367_vm0 = vcmask 138240   ;;  %v360_v4 = vld [vmem:[#allocation8 + $0x8] sm:$0xff]  ;;  %vm374_vm1 = vcmask 1040384   ;;  %vm352_vm2 = vcmask 130048  }
  0xb4   : > { %1130 = vsyncadd (%p1613_p2), [#allocation10], 4294966528  ;;  %v359_v2 = vld [vmem:[#allocation8] sm:$0xff]  ;;  %v803_v3 = vpack.c.bf16 %v365_v1, %v364_v0  ;;  %v366_v6 = vld [vmem:[#allocation9 + $0x10] sm:$0x1]  ;;  %v1166_v12 = vmov 0.0  }
  0xb5   : > { %v807_v5 = vpack.c.bf16 %v360_v4, %v359_v2  ;;  %v362_v7 = vld [vmem:[%s302_s27] sm:$0xff]  ;;  %v363_v10 = vld [vmem:[%s302_s27 + $0x8] sm:$0xff]  ;;  %539 = vst.msk [vmem:[#allocation2 + $0x8] sm:$0xff] %vm352_vm2, %v1166_v12  ;;  %538 = vst.msk [vmem:[#allocation2] sm:$0xff] %vm352_vm2, %v1166_v12  ;;  %s813_s24 = smul.u32 24, %s1458_s16  ;;  %vm355_vm3 = vcmask 122880  }
  0xb6   : > { %804 = vmatprep.subr.bf16.mxu1 %v803_v3  ;;  %v361_v8 = vld [vmem:[#allocation8 + $0x10] sm:$0x1]  ;;  %791 = vmatprep.mubr.msk.f32.mxu1 %vm367_vm0, %v362_v7  ;;  %v358_v11 = vld [vmem:[%s1462_s2 + $0x8] sm:$0xff]  ;;  %541 = vst.msk [vmem:[#allocation2 + $0x10] sm:$0x1] %vm355_vm3, %v1166_v12  ;;  %s1167_s17 = smov 112  }
  0xb7   : > { %v357_v9 = vld [vmem:[%s1462_s2] sm:$0xff]  ;;  %808 = vmatprep.subr.bf16.mxu0 %v807_v5  ;;  %806 = vmatpush3.bf16.msra.mxu1 %v803_v3  ;;  %s1490_s26 = scalar_lea.vmem [#allocation12], %s813_s24  ;;  %s814_s25 = smul.u32 384, %s1149_s21  ;;  %v583_v41 = vld [vmem:[#allocation11 + $0x8] sm:$0xff] }
  0xb8   : > { %810 = vmatpush3.bf16.msra.mxu0 %v807_v5  ;;  %789 = vmatprep.subr.msk.mxu1 %vm374_vm1, %v366_v6  ;;  %353 = vst.msk [vmem:[%s1490_s26] sm:$0xff] %vm352_vm2, %v1166_v12  ;;  %354 = vst.msk [vmem:[%s1490_s26 + $0x8] sm:$0xff] %vm352_vm2, %v1166_v12  ;;  %v582_v38 = vld [vmem:[#allocation11] sm:$0xff]  ;;  %s605_s30 = sshll.u32 %s1490_s26, 4  ;;  %v584_v42 = vld [vmem:[#allocation11 + $0x10] sm:$0x1]  ;;  %s1524_s30 = int_to_ptr.vmem [resolvable:$true] %s605_s30 }
  0xb9   : > { %798 = vmatprep.subr.msk.mxu0 %vm374_vm1, %v361_v8  ;;  %800 = vmatprep.mubr.msk.f32.mxu0 %vm367_vm0, %v357_v9  ;;  %356 = vst.msk [vmem:[%s1490_s26 + $0x10] sm:$0x1] %vm355_vm3, %v1166_v12  ;;  %s1522_s10 = scalar_lea.hbm %s1582_s5, %s814_s25  ;;  %s592_s21 = scalar_lea.sflag [#allocation5], %s1458_s16 }
  0xba   : > { %s1063_s9 = scalar_lea.vmem %s1524_s30, 384  ;;  %s1168_s29 = smov [#allocation12]  }
  0xbb   : > { %790 = vmatpush3.msk.msra.mxu1 %vm374_vm1, %v366_v6  ;;  %p1064_p4 = scmp.ne.s32.totalorder %s1524_s30, %s1063_s9  ;;  %s1067_s8 = sshll.u32 %s1168_s29, 4  ;;  %s1068_s8 = int_to_ptr.vmem [resolvable:$false] %s1067_s8 }
  0xbc   : > { %799 = vmatpush3.msk.msra.mxu0 %vm374_vm1, %v361_v8  ;;  %792 = vmatmul.mubr.msk.f32.vlgmr.msra.gmra.mrb[0].mxu1 %vm367_vm0, %v363_v10  ;;  %v543_v15 = vld [vmem:[#allocation2 + $0x8] sm:$0xff]  ;;  %v542_v19 = vld [vmem:[#allocation2] sm:$0xff]  ;;  %s1069_s0 = scalar_lea.vmem %s1068_s8, 768  ;;  %p1070_p13 = scmp.lt.s32.totalorder %s1524_s30, %s1068_s8 }
  0xbd   : > { %801 = vmatmul.mubr.msk.f32.vlgmr.msra.gmra.mrb[0].mxu0 %vm367_vm0, %v358_v11  ;;  %p1065_p8 = pnand %p1064_p4, %p1357_p10  ;;  %p1071_p3 = scmp.lt.s32.totalorder %s1069_s0, %s1063_s9 }
  0xbf   : > { %v564_v29 = vld [vmem:[%s1490_s26] sm:$0xff]  ;;  %v565_v32 = vld [vmem:[%s1490_s26 + $0x8] sm:$0xff]  ;;  %p1066_p1 = pneg %p1065_p8  ;;  %p1072_p5 = por %p1071_p3, %p1070_p13 }
  0xc0   : > { %v566_v33 = vld [vmem:[%s1490_s26 + $0x10] sm:$0x1] }
  0xc1   : > { %p1073_p7 = pnand %p1072_p5, %p1066_p1 }
 0x18f   : > { %v793_v13 = vpop.f32.mrb[0].mxu1 }
 0x190   : > { %v802_v14 = vpop.f32.mrb[0].mxu0  ;;  %v444_v16 = vpop.f32.mrb[1].mxu1 }
 0x191   : > { %v534_v17 = vadd.f32 %v802_v14, %v793_v13  ;;  %v528_v18 = vpop.f32.mrb[1].mxu0 }
 0x192   : > { %v529_v20 = vadd.f32 %v528_v18, %v444_v16 }
 0x193   : > { %v545_v21 = vadd.f32 %v543_v15, %v534_v17 }
 0x194   : > { %v544_v22 = vadd.f32 %v542_v19, %v529_v20  ;;  %552 = vrot.lane.b32.xlu0 %v529_v20, %s1167_s17 }
 0x195   : > { %547 = vst.msk [vmem:[#allocation2 + $0x8] sm:$0xff] %vm352_vm2, %v545_v21 }
 0x196   : > { %546 = vst.msk [vmem:[#allocation2] sm:$0xff] %vm352_vm2, %v544_v22 }
 0x198   : > { %554 = vrot.lane.b32.xlu0 %v534_v17, %s1167_s17 }
 0x19c   : > { %v549_v26 = vld [vmem:[#allocation2 + $0x9] sm:$0xff] }
 0x19d   : > { %v548_v24 = vld [vmem:[#allocation2 + $0x1] sm:$0xff] }
 0x206   : > { %v553_v23 = vpop.permute.xlu0 %552 }
 0x207   : > { %v558_v25 = vadd.f32 %v553_v23, %v548_v24 }
 0x209   : > { %560 = vst.msk [vmem:[#allocation2 + $0x1] sm:$0xff] %vm352_vm2, %v558_v25 }
 0x20a   : > { %v555_v27 = vpop.permute.xlu0 %554 }
 0x20b   : > { %v559_v28 = vadd.f32 %v555_v27, %v549_v26 }
 0x20d   : > { %561 = vst.msk [vmem:[#allocation2 + $0x9] sm:$0xff] %vm352_vm2, %v559_v28 }
 0x210   : > { %v567_v30 = vld [vmem:[#allocation2] sm:$0xff] }
 0x211   : > { %v570_v31 = vadd.f32 %v567_v30, %v564_v29 }
 0x213   : > { %573 = vst.msk [vmem:[%s1490_s26] sm:$0xff] %vm352_vm2, %v570_v31 }
 0x214   : > { %v568_v34 = vld [vmem:[#allocation2 + $0x8] sm:$0xff]  ;;  %v569_v35 = vld [vmem:[#allocation2 + $0x10] sm:$0x1] }
 0x215   : > { %v571_v36 = vadd.f32 %v568_v34, %v565_v32  ;;  %v572_v37 = vadd.f32 %v569_v35, %v566_v33 }
 0x217   : > { %574 = vst.msk [vmem:[%s1490_s26 + $0x8] sm:$0xff] %vm352_vm2, %v571_v36 }
 0x218   : > { %575 = vst.msk [vmem:[%s1490_s26 + $0x10] sm:$0x1] %vm355_vm3, %v572_v37 }
 0x21a   : > { %v579_v39 = vld [vmem:[%s1490_s26] sm:$0xff] }
 0x21b   : > { %v585_v40 = vmul.f32 %v582_v38, %v579_v39 }
 0x21d   : > { %588 = vst.msk [vmem:[%s1490_s26] sm:$0xff] %vm352_vm2, %v585_v40 }
 0x21e   : > { %v580_v43 = vld [vmem:[%s1490_s26 + $0x8] sm:$0xff] }
 0x21f   : > { %v581_v44 = vld [vmem:[%s1490_s26 + $0x10] sm:$0x1]  ;;  %v586_v45 = vmul.f32 %v583_v41, %v580_v43 }
 0x220   : > { %v587_v46 = vmul.f32 %v584_v42, %v581_v44 }
 0x221   : > { %589 = vst.msk [vmem:[%s1490_s26 + $0x8] sm:$0xff] %vm352_vm2, %v586_v45 }
 0x222   : > { %590 = vst.msk [vmem:[%s1490_s26 + $0x10] sm:$0x1] %vm355_vm3, %v587_v46 }
 0x223   : > { %1076 = shalt.err (!%p1073_p7)
}
 0x224   : > { %s1077_s14 = scalar_lea.hbm %s1522_s10, 384  ;;  %s1081_s7 = scalar_lea.hbm %s1582_s5, 768 }
 0x225   : > { %p1078_p12 = scmp.ne.s32.totalorder %s1522_s10, %s1077_s14  ;;  %p1082_p9 = scmp.lt.u32.totalorder %s1522_s10, %s1582_s5 }
 0x226   : > { %p1083_p0 = scmp.lt.u32.totalorder %s1081_s7, %s1077_s14  ;;  %p1085_p4 = scmp.lt.u32.totalorder %s1077_s14, %s1522_s10 }
 0x227   : > { %p1079_p6 = pnand %p1078_p12, %p1357_p10 }
 0x228   : > { %p1084_p2 = por %p1083_p0, %p1082_p9 }
 0x229   : > { %p1080_p11 = pneg %p1079_p6 }
 0x22a   : > { %p1086_p8 = por %p1085_p4, %p1084_p2 }
 0x22c   : > { %p1087_p1 = pnand %p1086_p8, %p1080_p11 }
 0x22e   : > { %1090 = shalt.err (!%p1087_p1)
}
 0x22f   : > { %s1169_s24 = smov 128   ;;  %s1170_s26 = smov 8  }
 0x230   : > { %831 = dma.vmem_to_hbm [thread:$0]  (%p1357_p10), %s1524_s30, 384, %s1522_s10, %s592_s21, %s1169_s24, %s1169_s24, %s1170_s26  }
 0x231 PF: > { %s1614_s17 = sld [smem:[#allocation18_spill]]  ;;  %s620_s25 = sand.u32 1, %s1137_s18  }
 0x232   : > { %p1616_p3 = scmp.ge.s32.totalorder %s1157_s23, 2  ;;  %s621_s13 = scalar_lea.sflag [#allocation5], %s620_s25 }
 0x237   : > { %p1615_p13 = scmp.ne.s32.totalorder %s1614_s17, 0 }
 0x239   : > { %p851_p5 = pnand %p1616_p3, %p1615_p13 }
 0x23b   : > { %1132 = dma.done.wait (!%p851_p5), %s621_s13, 384  }
 0x23c   : > { %1134 = vsyncadd (!%p851_p5), %s621_s13, 4294966912  ;;  %s25_s23 = sadd.s32 1, %s1157_s23   ;;  %s1617_s18 = smov %s1141_s19 }
 0x23d   : > { %p22_p7 = scmp.ge.s32.totalorder %s25_s23, 4   ;;  %s1618_s19 = smov %s1145_s20 }
 0x23e   : > { %s1619_s20 = smov %s1369_s15  ;;  %s1620_s21 = smov %s1153_s22 }
 0x23f   : > { %s1621_s22 = smov %s1623_s6  ;;  %24 = sbr.rel (!%p22_p7) target bundleno = 13 (0xd), region = 119 }
 0x246   :  { %626 = vsyncpa [#allocation4], 1 }
 0x247   :  { %628 = vsyncpa [#allocation4 + $0x1], 1 }
 0x248   :  { %629 = vsyncpa [#allocation7], 1 }
 0x249   :  { %631 = vsyncpa [#allocation7 + $0x1], 1 }
 0x24a   :  { %632 = vsyncpa [#allocation10], 1 }
 0x24b   :  { %633 = vsyncpa [#allocation5], 1 }
 0x24c   :  { %635 = vsyncpa [#allocation5 + $0x1], 1 }

</bundles_post_ra>
